<compile_context>
chip_gen: v7x
topology: tpu7x:2x2x1
jax: 0.10.0
libtpu: 0.0.40
codegen_flags: <defaults>
</compile_context>

<pallas_src>
import functools

import jax
import jax.numpy as jnp
import numpy as np
from jax.experimental import pallas as pl
from jax.experimental.pallas import tpu as pltpu

EMBED_DIM = 16
NUM_HEADS = 2
HEAD_DIM = EMBED_DIM // NUM_HEADS


# ----------------------------------------------------------------------------
# Kernel: one grid step == block_b batch elements.
#   x_ref     : (bt, N, E)            real input
#   w_all_ref : (E, H*8D)             packed projection columns (mxu dtype)
#   wo_ref    : (H, 2D, E)            folded output projection rows (mxu dtype)
#   o_ref     : (bt, 1, N*E)          lane-dense real output (f32)
# ----------------------------------------------------------------------------
def qmhsa_kernel(x_ref, w_all_ref, wo_ref, o_ref, *,
                 num_heads, head_dim, mxu_dtype, approx_recip):
    bt, n, e = x_ref.shape
    rows = bt * n
    d2 = 2 * head_dim

    # One wide projection matmul over the whole flattened row slab.
    xm = x_ref[...].reshape(rows, e).astype(mxu_dtype)
    projm = jnp.dot(xm, w_all_ref[...],
                    preferred_element_type=jnp.float32).astype(mxu_dtype)

    y = jnp.zeros((rows, e), jnp.float32)
    for h in range(num_heads):                       # static, tiny head count
        base = h * 4 * d2
        qa = projm[:, base:base + d2].reshape(bt, n, d2)            # [q_r|q_i]*s
        qb = projm[:, base + d2:base + 2 * d2].reshape(bt, n, d2)   # [q_i|-q_r]*s
        kc = projm[:, base + 2 * d2:base + 3 * d2].reshape(bt, n, d2)  # [k_r|k_i]
        vc = projm[:, base + 3 * d2:base + 4 * d2].reshape(bt, n, d2)  # [v_r|v_i]

        # Fused complex scores (q @ conj(k)^H), contraction length 2D.
        s_r = jnp.einsum("bnd,bmd->bnm", qa, kc,
                         preferred_element_type=jnp.float32)
        s_i = jnp.einsum("bnd,bmd->bnm", qb, kc,
                         preferred_element_type=jnp.float32)

        # |scores| * amp / sqrt(D)  (scale already folded into the q columns).
        # Not hypot: fine here, overflow would need |s| ~ 1e19 in f32.
        mag = jnp.sqrt(s_r * s_r + s_i * s_i)
        mx = jnp.max(mag, axis=-1, keepdims=True)
        p = jnp.exp(mag - mx)
        den = jnp.sum(p, axis=-1, keepdims=True)
        if approx_recip:
            attn = p * pl.reciprocal(den, approx=True)   # EUP slot, not VPU
        else:
            attn = p / den

        # attn @ [v_r|v_i] in one matmul; folded output projection
        # [Wo_r ; -Wo_i] accumulates straight into y (no head concat).
        out_c = jnp.einsum("bnm,bmd->bnd", attn.astype(mxu_dtype), vc,
                           preferred_element_type=jnp.float32)
        y = y + jnp.dot(out_c.reshape(rows, d2).astype(mxu_dtype), wo_ref[h],
                        preferred_element_type=jnp.float32)

    # Lane-dense store: each token's E values go into its 16-lane slot of the
    # (bt, 1, N*E) block -> dense out buffer / HBM writeback.
    y3 = y.reshape(bt, n, e)
    for i in range(n):
        o_ref[:, 0, i * e:(i + 1) * e] = y3[:, i, :]


# ----------------------------------------------------------------------------
# Parameter construction (mirrors the PyTorch module shapes; setup in plain JAX).
# ----------------------------------------------------------------------------
def make_unitary_proj(key, nmat):
    kr, ki = jax.random.split(key)
    w_r = jax.random.normal(kr, (nmat, nmat), jnp.float32)
    w_i = jax.random.normal(ki, (nmat, nmat), jnp.float32)
    q, _ = jnp.linalg.qr(w_r + 1j * w_i)
    a = jnp.conj(q).T                              # so out = x @ a
    return jnp.real(a).astype(jnp.float32), jnp.imag(a).astype(jnp.float32)


def init_params(key, embed_dim=EMBED_DIM):
    kq, kk, kv, ko = jax.random.split(key, 4)
    return {
        "q": make_unitary_proj(kq, embed_dim),
        "k": make_unitary_proj(kk, embed_dim),
        "v": make_unitary_proj(kv, embed_dim),
        "o": make_unitary_proj(ko, embed_dim),
        # QuantumPhaseGate.theta initialized to zeros, amplification to 1.0
        "theta": jnp.zeros((embed_dim,), jnp.float32),
        "amp": jnp.float32(1.0),
    }


# ----------------------------------------------------------------------------
# Wrapper-side folding (plain JAX, outside the kernel):
#   * per-head q/k/v columns packed into one (E, H*8D) RHS, with amp/sqrt(D)
#     folded into the q blocks (exact for amp >= 0: |s*z| = s*|z|),
#   * output projection folded with the phase gate and the "real + 0.1*imag"
#     combine:  W = diag(e^{i theta}) @ Ao * (1 - 0.1i), stacked per head as
#     [Re(W_h) ; -Im(W_h)]  ->  y = sum_h [out_r|out_i] @ Wo_h.
# ----------------------------------------------------------------------------
def fold_params(params, num_heads, mxu_dtype):
    E = params["theta"].shape[0]
    D = E // num_heads

    def to_c(rt):
        return rt[0].astype(jnp.complex64) + 1j * rt[1].astype(jnp.complex64)

    aq, ak, av, ao = (to_c(params["q"]), to_c(params["k"]),
                      to_c(params["v"]), to_c(params["o"]))

    # amp >= 0 assumed (true for the module's amplification parameter).
    s = jnp.asarray(params["amp"], jnp.float32) / np.float32(np.sqrt(D))

    def head_cols(a, h):
        cols = a[:, h * D:(h + 1) * D]
        return (jnp.real(cols).astype(jnp.float32),
                jnp.imag(cols).astype(jnp.float32))

    blocks = []
    for h in range(num_heads):
        qr, qi = head_cols(aq, h)
        kr, ki = head_cols(ak, h)
        vr, vi = head_cols(av, h)
        blocks += [s * qr, s * qi, s * qi, -(s * qr), kr, ki, vr, vi]
    w_all = jnp.concatenate(blocks, axis=1)              # (E, H*8D)

    phase = jnp.exp(1j * params["theta"].astype(jnp.complex64))
    w = (phase[:, None] * ao) * (1.0 - 0.1j)              # (E, E) complex
    w_r = jnp.real(w).astype(jnp.float32)
    w_i = jnp.imag(w).astype(jnp.float32)
    wo = jnp.stack(
        [jnp.concatenate([w_r[h * D:(h + 1) * D], -w_i[h * D:(h + 1) * D]],
                         axis=0) for h in range(num_heads)],
        axis=0)                                           # (H, 2D, E)
    return w_all.astype(mxu_dtype), wo.astype(mxu_dtype)


def _is_multi_tensorcore():
    """True on chips with 2 TensorCores per chip (v7x-class)."""
    try:
        kind = jax.devices()[0].device_kind.lower()
    except Exception:
        return False
    return ("v7" in kind) or ("tpu7" in kind)


def _pick_block_b(B, N, target_rows=2048, min_steps=1):
    """Largest divisor of B with ~target_rows rows per grid step, keeping at
    least `min_steps` grid steps (so both TensorCores work on v7x)."""
    bt = max(1, min(B, target_rows // max(N, 1)))
    if min_steps > 1:
        bt = min(bt, max(1, B // min_steps))
    while B % bt:
        bt -= 1
    return bt


# ----------------------------------------------------------------------------
# Wrapper calling pallas_call.
# ----------------------------------------------------------------------------
def quantum_mhsa(x, params, num_heads=NUM_HEADS, block_b=None, precise=False):
    B, N, E = x.shape
    D = E // num_heads
    assert num_heads * D == E

    # bf16 MXU operands (f32 accumulation) on the fast path; f32 everywhere on
    # the "precise" verification path.
    mxu_dtype = jnp.float32 if precise else jnp.bfloat16
    w_all, wo_cat = fold_params(params, num_heads, mxu_dtype)

    multi_tc = _is_multi_tensorcore()
    if block_b is None:
        min_steps = 2 if (multi_tc and B >= 2) else 1
        block_b = _pick_block_b(B, N, target_rows=2048, min_steps=min_steps)
    assert B % block_b == 0

    # v7x has 64 MiB VMEM/TC -> stay near the 32 MiB scoped default; v5e/v6e
    # have 128 MiB physical (v5e's scoped default is only 16 MiB, so raise it).
    vmem_limit = (32 if multi_tc else 64) * 1024 * 1024

    kernel = functools.partial(
        qmhsa_kernel, num_heads=num_heads, head_dim=D,
        mxu_dtype=mxu_dtype, approx_recip=not precise)

    out = pl.pallas_call(
        kernel,
        out_shape=jax.ShapeDtypeStruct((B, 1, N * E), jnp.float32),
        grid=(B // block_b,),
        in_specs=[
            pl.BlockSpec((block_b, N, E), lambda b: (b, 0, 0)),
            pl.BlockSpec((E, num_heads * 8 * D), lambda b: (0, 0)),
            pl.BlockSpec((num_heads, 2 * D, E), lambda b: (0, 0, 0)),
        ],
        out_specs=pl.BlockSpec((block_b, 1, N * E), lambda b: (b, 0, 0)),
        compiler_params=pltpu.CompilerParams(
            dimension_semantics=("parallel",),
            vmem_limit_bytes=vmem_limit),
    )(x, w_all, wo_cat)
    return out.reshape(B, N, E)


# ----------------------------------------------------------------------------
# Pure-JAX complex reference (unfolded math) for verification.
# ----------------------------------------------------------------------------
def reference(x, params, num_heads=NUM_HEADS):
    B, N, E = x.shape
    D = E // num_heads

    def to_c(rt):
        return rt[0].astype(jnp.complex64) + 1j * rt[1].astype(jnp.complex64)

    aq, ak, av, ao = (to_c(params["q"]), to_c(params["k"]),
                      to_c(params["v"]), to_c(params["o"]))
    xc = x.astype(jnp.complex64)
    q = (xc @ aq).reshape(B, N, num_heads, D).transpose(0, 2, 1, 3)
    k = (xc @ ak).reshape(B, N, num_heads, D).transpose(0, 2, 1, 3)
    v = (xc @ av).reshape(B, N, num_heads, D).transpose(0, 2, 1, 3)
    scores = jnp.einsum("bhnd,bhmd->bhnm", q, jnp.conj(k)) / (D ** 0.5)
    mag = jnp.abs(scores) * params["amp"]
    attn = jax.nn.softmax(mag, axis=-1).astype(jnp.complex64)
    out = jnp.einsum("bhnm,bhmd->bhnd", attn, v)
    out = out.transpose(0, 2, 1, 3).reshape(B, N, E)
    out = out * jnp.exp(1j * params["theta"].astype(jnp.complex64))  # phase gate
    out = out @ ao
    return jnp.real(out) + 0.1 * jnp.imag(out)


if __name__ == "__main__":
    key = jax.random.PRNGKey(0)
    k_param, k_theta, k_x = jax.random.split(key, 3)

    B, N = 2, 8
    params = init_params(k_param, EMBED_DIM)
    # PyTorch inits theta=0 / amp=1; use non-trivial values so the folded
    # phase-gate / 0.1*imag / amp paths are actually exercised.
    params["theta"] = 0.3 * jax.random.normal(k_theta, (EMBED_DIM,),
                                              jnp.float32)
    params["amp"] = jnp.float32(1.25)

    x = jax.random.normal(k_x, (B, N, EMBED_DIM), jnp.float32)

    ref = jax.block_until_ready(reference(x, params))

    # Fast path (default): bf16 MXU operands + approx reciprocal.
    out_fast = jax.block_until_ready(quantum_mhsa(x, params))
    np.testing.assert_allclose(np.asarray(out_fast), np.asarray(ref),
                               rtol=7e-2, atol=7e-2)

    # Precise path: f32 MXU + exact divide, proves the algebraic folds exactly.
    out_precise = jax.block_until_ready(quantum_mhsa(x, params, precise=True))
    np.testing.assert_allclose(np.asarray(out_precise), np.asarray(ref),
                               rtol=1e-4, atol=1e-4)

    print("KERNEL_OK")
</pallas_src>

<mosaic_0001>
module attributes {stable_mosaic.version = 11 : i64} {
  func.func @qmhsa_kernel(%arg0: i32, %arg1: memref<2x8x16xf32, #tpu.memory_space<vmem>>, %arg2: memref<16x128xbf16, #tpu.memory_space<vmem>>, %arg3: memref<2x16x16xbf16, #tpu.memory_space<vmem>>, %arg4: memref<2x1x128xf32, #tpu.memory_space<vmem>>) attributes {dimension_semantics = [#tpu.dimension_semantics<parallel>], iteration_bounds = array<i64: 1>, scalar_prefetch = 0 : i64, scratch_operands = 0 : i64, tpu.core_type = #tpu.core_type<tc>, window_params = [{transform_indices = @transform_0, window_bounds = array<i64: 2, 8, 16>}, {pipeline_mode = #tpu.pipeline_mode<synchronous>, transform_indices = @transform_1, window_bounds = array<i64: 16, 128>}, {pipeline_mode = #tpu.pipeline_mode<synchronous>, transform_indices = @transform_2, window_bounds = array<i64: 2, 16, 16>}, {transform_indices = @transform_3, window_bounds = array<i64: 2, 1, 128>}]} {
    %c0 = arith.constant 0 : index
    %c0_0 = arith.constant 0 : index
    %c0_1 = arith.constant 0 : index
    %0 = vector.load %arg1[%c0, %c0_0, %c0_1] : memref<2x8x16xf32, #tpu.memory_space<vmem>>, vector<2x8x16xf32>
    %1 = vector.shape_cast %0 : vector<2x8x16xf32> to vector<16x16xf32>
    %2 = arith.truncf %1 : vector<16x16xf32> to vector<16x16xbf16>
    %c0_2 = arith.constant 0 : index
    %c0_3 = arith.constant 0 : index
    %3 = vector.load %arg2[%c0_2, %c0_3] : memref<16x128xbf16, #tpu.memory_space<vmem>>, vector<16x128xbf16>
    %cst = arith.constant dense<0.000000e+00> : vector<16x128xf32>
    %4 = tpu.matmul %2, %3, %cst {dimension_numbers = #tpu.dot_dimension_numbers<[1], [0], [0], [1], [0, 0, 1, 1], [], []>} : vector<16x16xbf16>, vector<16x128xbf16>, vector<16x128xf32> -> vector<16x128xf32>
    %5 = arith.truncf %4 : vector<16x128xf32> to vector<16x128xbf16>
    %cst_4 = arith.constant 0.000000e+00 : f32
    %6 = vector.broadcast %cst_4 : f32 to vector<16x16xf32>
    %7 = vector.extract_strided_slice %5 {offsets = [0, 0], sizes = [16, 16], strides = [1, 1]} : vector<16x128xbf16> to vector<16x16xbf16>
    %8 = vector.shape_cast %7 : vector<16x16xbf16> to vector<2x8x16xbf16>
    %9 = vector.extract_strided_slice %5 {offsets = [0, 16], sizes = [16, 16], strides = [1, 1]} : vector<16x128xbf16> to vector<16x16xbf16>
    %10 = vector.shape_cast %9 : vector<16x16xbf16> to vector<2x8x16xbf16>
    %11 = vector.extract_strided_slice %5 {offsets = [0, 32], sizes = [16, 16], strides = [1, 1]} : vector<16x128xbf16> to vector<16x16xbf16>
    %12 = vector.shape_cast %11 : vector<16x16xbf16> to vector<2x8x16xbf16>
    %13 = vector.extract_strided_slice %5 {offsets = [0, 48], sizes = [16, 16], strides = [1, 1]} : vector<16x128xbf16> to vector<16x16xbf16>
    %14 = vector.shape_cast %13 : vector<16x16xbf16> to vector<2x8x16xbf16>
    "tpu.trace_start"() <{level = 10 : i32, message = "bnd,bmd->bnm"}> : () -> ()
    %cst_5 = arith.constant dense<0.000000e+00> : vector<2x8x8xf32>
    %15 = tpu.matmul %8, %12, %cst_5 {dimension_numbers = #tpu.dot_dimension_numbers<[2], [2], [1], [1], [0, 0, 0, 1, 1, 1], [0], [0]>} : vector<2x8x16xbf16>, vector<2x8x16xbf16>, vector<2x8x8xf32> -> vector<2x8x8xf32>
    %cst_6 = arith.constant dense<0.000000e+00> : vector<2x8x8xf32>
    %16 = tpu.matmul %10, %12, %cst_6 {dimension_numbers = #tpu.dot_dimension_numbers<[2], [2], [1], [1], [0, 0, 0, 1, 1, 1], [0], [0]>} : vector<2x8x16xbf16>, vector<2x8x16xbf16>, vector<2x8x8xf32> -> vector<2x8x8xf32>
    "tpu.trace_stop"() : () -> ()
    %17 = arith.mulf %15, %15 : vector<2x8x8xf32>
    %18 = arith.mulf %16, %16 : vector<2x8x8xf32>
    %19 = arith.addf %17, %18 : vector<2x8x8xf32>
    %20 = math.sqrt %19 : vector<2x8x8xf32>
    %cst_7 = arith.constant dense<0xFF800000> : vector<2x8xf32>
    %21 = vector.multi_reduction <maximumf>, %20, %cst_7 [2] : vector<2x8x8xf32> to vector<2x8xf32>
    %22 = vector.shape_cast %21 : vector<2x8xf32> to vector<2x8x1xf32>
    %23 = vector.broadcast %22 : vector<2x8x1xf32> to vector<2x8x8xf32>
    %24 = arith.subf %20, %23 : vector<2x8x8xf32>
    %25 = math.exp %24 : vector<2x8x8xf32>
    %cst_8 = arith.constant dense<0.000000e+00> : vector<2x8xf32>
    %26 = vector.multi_reduction <add>, %25, %cst_8 [2] : vector<2x8x8xf32> to vector<2x8xf32>
    %27 = vector.shape_cast %26 : vector<2x8xf32> to vector<2x8x1xf32>
    %28 = tpu.reciprocal %27 {approx = true} : vector<2x8x1xf32> -> vector<2x8x1xf32>
    %29 = vector.broadcast %28 : vector<2x8x1xf32> to vector<2x8x8xf32>
    %30 = arith.mulf %25, %29 : vector<2x8x8xf32>
    %31 = arith.truncf %30 : vector<2x8x8xf32> to vector<2x8x8xbf16>
    "tpu.trace_start"() <{level = 10 : i32, message = "bnm,bmd->bnd"}> : () -> ()
    %cst_9 = arith.constant dense<0.000000e+00> : vector<2x8x16xf32>
    %32 = tpu.matmul %31, %14, %cst_9 {dimension_numbers = #tpu.dot_dimension_numbers<[2], [1], [1], [2], [0, 0, 0, 1, 1, 2], [0], [0]>} : vector<2x8x8xbf16>, vector<2x8x16xbf16>, vector<2x8x16xf32> -> vector<2x8x16xf32>
    "tpu.trace_stop"() : () -> ()
    %33 = vector.shape_cast %32 : vector<2x8x16xf32> to vector<16x16xf32>
    %34 = arith.truncf %33 : vector<16x16xf32> to vector<16x16xbf16>
    %c0_10 = arith.constant 0 : index
    %c0_11 = arith.constant 0 : index
    %c0_12 = arith.constant 0 : index
    %35 = vector.load %arg3[%c0_10, %c0_11, %c0_12] : memref<2x16x16xbf16, #tpu.memory_space<vmem>>, vector<1x16x16xbf16>
    %36 = vector.shape_cast %35 : vector<1x16x16xbf16> to vector<16x16xbf16>
    %cst_13 = arith.constant dense<0.000000e+00> : vector<16x16xf32>
    %37 = tpu.matmul %34, %36, %cst_13 {dimension_numbers = #tpu.dot_dimension_numbers<[1], [0], [0], [1], [0, 0, 1, 1], [], []>} : vector<16x16xbf16>, vector<16x16xbf16>, vector<16x16xf32> -> vector<16x16xf32>
    %38 = arith.addf %6, %37 : vector<16x16xf32>
    %39 = vector.extract_strided_slice %5 {offsets = [0, 64], sizes = [16, 16], strides = [1, 1]} : vector<16x128xbf16> to vector<16x16xbf16>
    %40 = vector.shape_cast %39 : vector<16x16xbf16> to vector<2x8x16xbf16>
    %41 = vector.extract_strided_slice %5 {offsets = [0, 80], sizes = [16, 16], strides = [1, 1]} : vector<16x128xbf16> to vector<16x16xbf16>
    %42 = vector.shape_cast %41 : vector<16x16xbf16> to vector<2x8x16xbf16>
    %43 = vector.extract_strided_slice %5 {offsets = [0, 96], sizes = [16, 16], strides = [1, 1]} : vector<16x128xbf16> to vector<16x16xbf16>
    %44 = vector.shape_cast %43 : vector<16x16xbf16> to vector<2x8x16xbf16>
    %45 = vector.extract_strided_slice %5 {offsets = [0, 112], sizes = [16, 16], strides = [1, 1]} : vector<16x128xbf16> to vector<16x16xbf16>
    %46 = vector.shape_cast %45 : vector<16x16xbf16> to vector<2x8x16xbf16>
    "tpu.trace_start"() <{level = 10 : i32, message = "bnd,bmd->bnm"}> : () -> ()
    %cst_14 = arith.constant dense<0.000000e+00> : vector<2x8x8xf32>
    %47 = tpu.matmul %40, %44, %cst_14 {dimension_numbers = #tpu.dot_dimension_numbers<[2], [2], [1], [1], [0, 0, 0, 1, 1, 1], [0], [0]>} : vector<2x8x16xbf16>, vector<2x8x16xbf16>, vector<2x8x8xf32> -> vector<2x8x8xf32>
    %cst_15 = arith.constant dense<0.000000e+00> : vector<2x8x8xf32>
    %48 = tpu.matmul %42, %44, %cst_15 {dimension_numbers = #tpu.dot_dimension_numbers<[2], [2], [1], [1], [0, 0, 0, 1, 1, 1], [0], [0]>} : vector<2x8x16xbf16>, vector<2x8x16xbf16>, vector<2x8x8xf32> -> vector<2x8x8xf32>
    "tpu.trace_stop"() : () -> ()
    %49 = arith.mulf %47, %47 : vector<2x8x8xf32>
    %50 = arith.mulf %48, %48 : vector<2x8x8xf32>
    %51 = arith.addf %49, %50 : vector<2x8x8xf32>
    %52 = math.sqrt %51 : vector<2x8x8xf32>
    %cst_16 = arith.constant dense<0xFF800000> : vector<2x8xf32>
    %53 = vector.multi_reduction <maximumf>, %52, %cst_16 [2] : vector<2x8x8xf32> to vector<2x8xf32>
    %54 = vector.shape_cast %53 : vector<2x8xf32> to vector<2x8x1xf32>
    %55 = vector.broadcast %54 : vector<2x8x1xf32> to vector<2x8x8xf32>
    %56 = arith.subf %52, %55 : vector<2x8x8xf32>
    %57 = math.exp %56 : vector<2x8x8xf32>
    %cst_17 = arith.constant dense<0.000000e+00> : vector<2x8xf32>
    %58 = vector.multi_reduction <add>, %57, %cst_17 [2] : vector<2x8x8xf32> to vector<2x8xf32>
    %59 = vector.shape_cast %58 : vector<2x8xf32> to vector<2x8x1xf32>
    %60 = tpu.reciprocal %59 {approx = true} : vector<2x8x1xf32> -> vector<2x8x1xf32>
    %61 = vector.broadcast %60 : vector<2x8x1xf32> to vector<2x8x8xf32>
    %62 = arith.mulf %57, %61 : vector<2x8x8xf32>
    %63 = arith.truncf %62 : vector<2x8x8xf32> to vector<2x8x8xbf16>
    "tpu.trace_start"() <{level = 10 : i32, message = "bnm,bmd->bnd"}> : () -> ()
    %cst_18 = arith.constant dense<0.000000e+00> : vector<2x8x16xf32>
    %64 = tpu.matmul %63, %46, %cst_18 {dimension_numbers = #tpu.dot_dimension_numbers<[2], [1], [1], [2], [0, 0, 0, 1, 1, 2], [0], [0]>} : vector<2x8x8xbf16>, vector<2x8x16xbf16>, vector<2x8x16xf32> -> vector<2x8x16xf32>
    "tpu.trace_stop"() : () -> ()
    %65 = vector.shape_cast %64 : vector<2x8x16xf32> to vector<16x16xf32>
    %66 = arith.truncf %65 : vector<16x16xf32> to vector<16x16xbf16>
    %c1 = arith.constant 1 : index
    %c0_19 = arith.constant 0 : index
    %c0_20 = arith.constant 0 : index
    %67 = vector.load %arg3[%c1, %c0_19, %c0_20] : memref<2x16x16xbf16, #tpu.memory_space<vmem>>, vector<1x16x16xbf16>
    %68 = vector.shape_cast %67 : vector<1x16x16xbf16> to vector<16x16xbf16>
    %cst_21 = arith.constant dense<0.000000e+00> : vector<16x16xf32>
    %69 = tpu.matmul %66, %68, %cst_21 {dimension_numbers = #tpu.dot_dimension_numbers<[1], [0], [0], [1], [0, 0, 1, 1], [], []>} : vector<16x16xbf16>, vector<16x16xbf16>, vector<16x16xf32> -> vector<16x16xf32>
    %70 = arith.addf %38, %69 : vector<16x16xf32>
    %71 = vector.shape_cast %70 : vector<16x16xf32> to vector<2x8x16xf32>
    %72 = vector.extract_strided_slice %71 {offsets = [0, 0, 0], sizes = [2, 1, 16], strides = [1, 1, 1]} : vector<2x8x16xf32> to vector<2x1x16xf32>
    %73 = vector.shape_cast %72 : vector<2x1x16xf32> to vector<2x16xf32>
    %c0_22 = arith.constant 0 : index
    %c0_23 = arith.constant 0 : index
    %c0_24 = arith.constant 0 : index
    %74 = vector.load %arg4[%c0_22, %c0_23, %c0_24] : memref<2x1x128xf32, #tpu.memory_space<vmem>>, vector<2x1x16xf32>
    %75 = vector.shape_cast %74 : vector<2x1x16xf32> to vector<2x16xf32>
    %76 = vector.shape_cast %73 : vector<2x16xf32> to vector<2x1x16xf32>
    tpu.vector_store %arg4[%c0_22, %c0_23, %c0_24], %76 {strides = array<i32>} : memref<2x1x128xf32, #tpu.memory_space<vmem>>, vector<2x1x16xf32>,
    %77 = vector.extract_strided_slice %71 {offsets = [0, 1, 0], sizes = [2, 1, 16], strides = [1, 1, 1]} : vector<2x8x16xf32> to vector<2x1x16xf32>
    %78 = vector.shape_cast %77 : vector<2x1x16xf32> to vector<2x16xf32>
    %c0_25 = arith.constant 0 : index
    %c0_26 = arith.constant 0 : index
    %c16 = arith.constant 16 : index
    %79 = vector.load %arg4[%c0_25, %c0_26, %c16] : memref<2x1x128xf32, #tpu.memory_space<vmem>>, vector<2x1x16xf32>
    %80 = vector.shape_cast %79 : vector<2x1x16xf32> to vector<2x16xf32>
    %81 = vector.shape_cast %78 : vector<2x16xf32> to vector<2x1x16xf32>
    tpu.vector_store %arg4[%c0_25, %c0_26, %c16], %81 {strides = array<i32>} : memref<2x1x128xf32, #tpu.memory_space<vmem>>, vector<2x1x16xf32>,
    %82 = vector.extract_strided_slice %71 {offsets = [0, 2, 0], sizes = [2, 1, 16], strides = [1, 1, 1]} : vector<2x8x16xf32> to vector<2x1x16xf32>
    %83 = vector.shape_cast %82 : vector<2x1x16xf32> to vector<2x16xf32>
    %c0_27 = arith.constant 0 : index
    %c0_28 = arith.constant 0 : index
    %c32 = arith.constant 32 : index
    %84 = vector.load %arg4[%c0_27, %c0_28, %c32] : memref<2x1x128xf32, #tpu.memory_space<vmem>>, vector<2x1x16xf32>
    %85 = vector.shape_cast %84 : vector<2x1x16xf32> to vector<2x16xf32>
    %86 = vector.shape_cast %83 : vector<2x16xf32> to vector<2x1x16xf32>
    tpu.vector_store %arg4[%c0_27, %c0_28, %c32], %86 {strides = array<i32>} : memref<2x1x128xf32, #tpu.memory_space<vmem>>, vector<2x1x16xf32>,
    %87 = vector.extract_strided_slice %71 {offsets = [0, 3, 0], sizes = [2, 1, 16], strides = [1, 1, 1]} : vector<2x8x16xf32> to vector<2x1x16xf32>
    %88 = vector.shape_cast %87 : vector<2x1x16xf32> to vector<2x16xf32>
    %c0_29 = arith.constant 0 : index
    %c0_30 = arith.constant 0 : index
    %c48 = arith.constant 48 : index
    %89 = vector.load %arg4[%c0_29, %c0_30, %c48] : memref<2x1x128xf32, #tpu.memory_space<vmem>>, vector<2x1x16xf32>
    %90 = vector.shape_cast %89 : vector<2x1x16xf32> to vector<2x16xf32>
    %91 = vector.shape_cast %88 : vector<2x16xf32> to vector<2x1x16xf32>
    tpu.vector_store %arg4[%c0_29, %c0_30, %c48], %91 {strides = array<i32>} : memref<2x1x128xf32, #tpu.memory_space<vmem>>, vector<2x1x16xf32>,
    %92 = vector.extract_strided_slice %71 {offsets = [0, 4, 0], sizes = [2, 1, 16], strides = [1, 1, 1]} : vector<2x8x16xf32> to vector<2x1x16xf32>
    %93 = vector.shape_cast %92 : vector<2x1x16xf32> to vector<2x16xf32>
    %c0_31 = arith.constant 0 : index
    %c0_32 = arith.constant 0 : index
    %c64 = arith.constant 64 : index
    %94 = vector.load %arg4[%c0_31, %c0_32, %c64] : memref<2x1x128xf32, #tpu.memory_space<vmem>>, vector<2x1x16xf32>
    %95 = vector.shape_cast %94 : vector<2x1x16xf32> to vector<2x16xf32>
    %96 = vector.shape_cast %93 : vector<2x16xf32> to vector<2x1x16xf32>
    tpu.vector_store %arg4[%c0_31, %c0_32, %c64], %96 {strides = array<i32>} : memref<2x1x128xf32, #tpu.memory_space<vmem>>, vector<2x1x16xf32>,
    %97 = vector.extract_strided_slice %71 {offsets = [0, 5, 0], sizes = [2, 1, 16], strides = [1, 1, 1]} : vector<2x8x16xf32> to vector<2x1x16xf32>
    %98 = vector.shape_cast %97 : vector<2x1x16xf32> to vector<2x16xf32>
    %c0_33 = arith.constant 0 : index
    %c0_34 = arith.constant 0 : index
    %c80 = arith.constant 80 : index
    %99 = vector.load %arg4[%c0_33, %c0_34, %c80] : memref<2x1x128xf32, #tpu.memory_space<vmem>>, vector<2x1x16xf32>
    %100 = vector.shape_cast %99 : vector<2x1x16xf32> to vector<2x16xf32>
    %101 = vector.shape_cast %98 : vector<2x16xf32> to vector<2x1x16xf32>
    tpu.vector_store %arg4[%c0_33, %c0_34, %c80], %101 {strides = array<i32>} : memref<2x1x128xf32, #tpu.memory_space<vmem>>, vector<2x1x16xf32>,
    %102 = vector.extract_strided_slice %71 {offsets = [0, 6, 0], sizes = [2, 1, 16], strides = [1, 1, 1]} : vector<2x8x16xf32> to vector<2x1x16xf32>
    %103 = vector.shape_cast %102 : vector<2x1x16xf32> to vector<2x16xf32>
    %c0_35 = arith.constant 0 : index
    %c0_36 = arith.constant 0 : index
    %c96 = arith.constant 96 : index
    %104 = vector.load %arg4[%c0_35, %c0_36, %c96] : memref<2x1x128xf32, #tpu.memory_space<vmem>>, vector<2x1x16xf32>
    %105 = vector.shape_cast %104 : vector<2x1x16xf32> to vector<2x16xf32>
    %106 = vector.shape_cast %103 : vector<2x16xf32> to vector<2x1x16xf32>
    tpu.vector_store %arg4[%c0_35, %c0_36, %c96], %106 {strides = array<i32>} : memref<2x1x128xf32, #tpu.memory_space<vmem>>, vector<2x1x16xf32>,
    %107 = vector.extract_strided_slice %71 {offsets = [0, 7, 0], sizes = [2, 1, 16], strides = [1, 1, 1]} : vector<2x8x16xf32> to vector<2x1x16xf32>
    %108 = vector.shape_cast %107 : vector<2x1x16xf32> to vector<2x16xf32>
    %c0_37 = arith.constant 0 : index
    %c0_38 = arith.constant 0 : index
    %c112 = arith.constant 112 : index
    %109 = vector.load %arg4[%c0_37, %c0_38, %c112] : memref<2x1x128xf32, #tpu.memory_space<vmem>>, vector<2x1x16xf32>
    %110 = vector.shape_cast %109 : vector<2x1x16xf32> to vector<2x16xf32>
    %111 = vector.shape_cast %108 : vector<2x16xf32> to vector<2x1x16xf32>
    tpu.vector_store %arg4[%c0_37, %c0_38, %c112], %111 {strides = array<i32>} : memref<2x1x128xf32, #tpu.memory_space<vmem>>, vector<2x1x16xf32>,
    return
  }
  func.func @transform_0(%arg0: i32) -> (i32, i32, i32) {
    %c0_i32 = arith.constant 0 : i32
    %c0_i32_0 = arith.constant 0 : i32
    %c0_i32_1 = arith.constant 0 : i32
    return %arg0, %c0_i32, %c0_i32_0 : i32, i32, i32
  }
  func.func @transform_1(%arg0: i32) -> (i32, i32) {
    %c0_i32 = arith.constant 0 : i32
    %c0_i32_0 = arith.constant 0 : i32
    %c0_i32_1 = arith.constant 0 : i32
    return %c0_i32, %c0_i32_0 : i32, i32
  }
  func.func @transform_2(%arg0: i32) -> (i32, i32, i32) {
    %c0_i32 = arith.constant 0 : i32
    %c0_i32_0 = arith.constant 0 : i32
    %c0_i32_1 = arith.constant 0 : i32
    %c0_i32_2 = arith.constant 0 : i32
    return %c0_i32, %c0_i32_0, %c0_i32_1 : i32, i32, i32
  }
  func.func @transform_3(%arg0: i32) -> (i32, i32, i32) {
    %c0_i32 = arith.constant 0 : i32
    %c0_i32_0 = arith.constant 0 : i32
    %c0_i32_1 = arith.constant 0 : i32
    return %arg0, %c0_i32, %c0_i32_0 : i32, i32, i32
  }
}

</mosaic_0001>

<bundles_post_ra>
// kernel: tpu_custom_call.1
= control target key start
LH: loop header
LB: loop body
LE: loop exit
PB: predicated region body
PF: predicated region fallthrough
CT: control target
= control target key end

     0   :  { %8 = vsyncpa [#allocation3], 0  ;;  %s1480_s0 = inlined_call_operand.hbm [shape: f32[2,8,16], index: 0, kind: input, shape index: {}]   ;;  %s1481_s1 = inlined_call_operand.hbm [shape: bf16[16,128], index: 1, kind: input, shape index: {}]   ;;  %s1482_s2 = inlined_call_operand.hbm [shape: bf16[2,16,16], index: 2, kind: input, shape index: {}]   ;;  %s1483_s3 = inlined_call_operand.hbm [shape: f32[2,1,128], index: 3, kind: output, shape index: {}]  }
   0x1   :  { %9 = vsyncpa [#allocation6], 0 }
   0x2   :  { %10 = vsyncpa [#allocation4], 0  ;;  %s1254_s12 = smov [#allocation5]   ;;  %s1160_s16 = scalar_lea.hbm %s1481_s1, 128 }
   0x3   :  { %s28_s13 = sshll.u32 %s1254_s12, 4  ;;  %p1161_p0 = scmp.ne.s32.totalorder %s1481_s1, %s1160_s16  ;;  %s29_s13 = int_to_ptr.vmem [resolvable:$true] %s28_s13 }
   0x4   :  { %p1164_p1 = scmp.lt.u32.totalorder %s1160_s16, %s1481_s1 }
   0x6   :  { %p1166_p2 = pnand %p1164_p1, %p1161_p0 }
   0x8   :  { %1169 = shalt.err (!%p1166_p2)
}
   0x9   :  { %s1170_s21 = scalar_lea.vmem %s29_s13, 128  ;;  %p1175_p4 = scmp.lt.s32.totalorder %s29_s13, %s29_s13 }
   0xa   :  { %p1171_p3 = scmp.ne.s32.totalorder %s29_s13, %s1170_s21  ;;  %p1176_p5 = scmp.lt.s32.totalorder %s1170_s21, %s1170_s21 }
   0xc   :  { %p1177_p6 = por %p1176_p5, %p1175_p4 }
   0xe   :  { %p1178_p7 = pnand %p1177_p6, %p1171_p3 }
  0x10   :  { %1181 = shalt.err (!%p1178_p7)
}
  0x11   :  { %s1255_s22 = smov 64   ;;  %s1256_s23 = smov 4  }
  0x12   :  { %34 = dma.hbm_to_vmem [thread:$0]  %s1481_s1, 128, %s29_s13, [#allocation6], %s1255_s22, %s1255_s22, %s1256_s23  }
  0x13   :  { %s1257_s26 = smov [#allocation2]   ;;  %s1182_s30 = scalar_lea.hbm %s1480_s0, 256 }
  0x14   :  { %s16_s27 = sshll.u32 %s1257_s26, 4  ;;  %p1183_p8 = scmp.ne.s32.totalorder %s1480_s0, %s1182_s30  ;;  %s17_s27 = int_to_ptr.vmem [resolvable:$true] %s16_s27 }
  0x15   :  { %p1186_p9 = scmp.lt.u32.totalorder %s1182_s30, %s1480_s0 }
  0x17   :  { %p1188_p10 = pnand %p1186_p9, %p1183_p8 }
  0x19   :  { %1191 = shalt.err (!%p1188_p10)
}
  0x1a   :  { %s1192_s8 = scalar_lea.vmem %s17_s27, 256  ;;  %p1197_p12 = scmp.lt.s32.totalorder %s17_s27, %s17_s27 }
  0x1b   :  { %p1193_p11 = scmp.ne.s32.totalorder %s17_s27, %s1192_s8  ;;  %p1198_p13 = scmp.lt.s32.totalorder %s1192_s8, %s1192_s8 }
  0x1d   :  { %p1199_p0 = por %p1198_p13, %p1197_p12 }
  0x1f   :  { %p1200_p1 = pnand %p1199_p0, %p1193_p11 }
  0x21   :  { %1203 = shalt.err (!%p1200_p1)
}
  0x22   :  { %s1258_s1 = smov 128   ;;  %s1259_s9 = smov 8  }
  0x23   :  { %22 = dma.hbm_to_vmem [thread:$0]  %s1480_s0, 256, %s17_s27, [#allocation3], %s1258_s1, %s1258_s1, %s1259_s9  }
  0x24   :  { %s1260_s12 = smov [#allocation7]   ;;  %s1204_s16 = scalar_lea.hbm %s1482_s2, 256 }
  0x25   :  { %s40_s13 = sshll.u32 %s1260_s12, 4  ;;  %p1205_p2 = scmp.ne.s32.totalorder %s1482_s2, %s1204_s16  ;;  %s41_s13 = int_to_ptr.vmem [resolvable:$true] %s40_s13 }
  0x26   :  { %p1208_p3 = scmp.lt.u32.totalorder %s1204_s16, %s1482_s2 }
  0x28   :  { %p1210_p4 = pnand %p1208_p3, %p1205_p2 }
  0x2a   :  { %1213 = shalt.err (!%p1210_p4)
}
  0x2b   :  { %s1214_s21 = scalar_lea.vmem %s41_s13, 256  ;;  %p1219_p6 = scmp.lt.s32.totalorder %s41_s13, %s41_s13 }
  0x2c   :  { %p1215_p5 = scmp.ne.s32.totalorder %s41_s13, %s1214_s21  ;;  %p1220_p7 = scmp.lt.s32.totalorder %s1214_s21, %s1214_s21 }
  0x2e   :  { %p1221_p8 = por %p1220_p7, %p1219_p6 }
  0x30   :  { %p1222_p9 = pnand %p1221_p8, %p1215_p5 }
  0x32   :  { %1225 = shalt.err (!%p1222_p9)
}
  0x33   :  { %46 = dma.hbm_to_vmem [thread:$0]  %s1482_s2, 256, %s41_s13, [#allocation6], %s1255_s22, %s1255_s22, %s1256_s23  }
  0x34   :  { %1248 = dma.done.wait [#allocation3], 256  }
  0x35   :  { %1249 = vsyncadd [#allocation3], 4294967040 }
  0x36   :  { %1250 = dma.done.wait [#allocation6], 384  }
  0x37   :  { %1251 = vsyncadd [#allocation6], 4294966912  ;;  %v1261_v0 = vmov 0.0   ;;  %vm1262_vm0 = vmmov 0   ;;  %v1133_v1 = vld [vmem:[#allocation5] sm:$0xff]   ;;  %v57_v2 = vld [vmem:[#allocation2] sm:$0xff] }
  0x38   :  { %1022 = vmatprep.subr.bf16.mxu0 %v1261_v0  ;;  %1024 = vmatprep.mubr.msk.bf16.mxu0 %vm1262_vm0, %v1261_v0  ;;  %v58_v3 = vld [vmem:[#allocation2 + $0x8] sm:$0xff]  ;;  %vm68_vm1 = vcmask 130048   ;;  %s1263_s2 = smov 112   ;;  %s1264_s23 = smov 96   ;;  %vm325_vm2 = vcmask 64512   ;;  %vm355_vm7 = vcmask 1043456  }
  0x39   :  { %1040 = vmatprep.subr.bf16.mxu1 %v1261_v0  ;;  %1042 = vmatprep.mubr.msk.bf16.mxu1 %vm1262_vm0, %v1261_v0  ;;  %v59_v4 = vpack.c.bf16 %v58_v3, %v57_v2  ;;  %s1265_s25 = smov 80   ;;  %s1266_s26 = smov 32   ;;  %vm884_vm12 = vcmask 122880   ;;  %vm895_vm13 = vcmask 255105   ;;  %vm904_vm14 = vcmask 387330  }
  0x3a   :  { %1023 = vmatpush3.bf16.msra.mxu0 %v1133_v1  ;;  %s1267_s27 = smov 48   ;;  %s1268_s28 = smov 16   ;;  %vm913_vm15 = vcmask 519555  }
  0x3b   :  { %1028 = vmatprep.subr.bf16.mxu0 %v1261_v0 }
  0x3d   :  { %1025 = vmatmul.mubr.msk.bf16.vlgmr.msra.gmra.mrb[0].mxu0 %vm68_vm1, %v59_v4 }
  0x3e   :  { %1030 = vmatprep.mubr.msk.bf16.mxu0 %vm1262_vm0, %v1261_v0 }
 0x110   :  { %v106_v5 = vpop.f32.mrb[0].mxu0 }
 0x111   :  { %v1343_v6 = vpack.c.bf16 %v106_v5, %v106_v5  ;;  %v1026_v7 = vpop.f32.mrb[1].mxu0 }
 0x112   :  { %v109_v8 = vpop.f32.mrb[2].mxu0 }
 0x113   :  { %215 = vrot.lane.b32.xlu1 %v1343_v6, %s1263_s2  ;;  %119 = vrot.lane.b32.xlu0 %v1343_v6, %s1264_s23  ;;  %v1027_v9 = vpop.f32.mrb[3].mxu0  ;;  %v1349_v10 = vpack.c.bf16 %v109_v8, %v109_v8 }
 0x117   :  { %260 = vrot.lane.b32.xlu1 %v1349_v10, %s1263_s2  ;;  %167 = vrot.lane.b32.xlu0 %v1349_v10, %s1264_s23 }
 0x185   :  { %v120_v11 = vpop.permute.xlu0 %119  ;;  %v216_v14 = vpop.permute.xlu1 %215 }
 0x186   :  { %v125_v12 = vsel %vm68_vm1, %v120_v11, 0 }
 0x187   :  { %1029 = vmatpush3.bf16.xpose.msra.mxu0 %v125_v12  ;;  %1041 = vmatpush3.bf16.xpose.msra.mxu1 %v125_v12 }
 0x188   :  { %1034 = vmatprep.subr.bf16.mxu0 %v1261_v0  ;;  %1052 = vmatprep.subr.bf16.mxu1 %v1261_v0 }
 0x189   :  { %v168_v13 = vpop.permute.xlu0 %167  ;;  %v261_v16 = vpop.permute.xlu1 %260 }
 0x18a   :  { %v173_v15 = vsel %vm68_vm1, %v168_v13, 0 }
 0x18e   :  { %1031 = vmatmul.mubr.msk.bf16.vlgmr.msra.gmra.mrb[4].mxu0 %vm68_vm1, %v1343_v6  ;;  %1043 = vmatmul.mubr.msk.bf16.vlgmr.msra.gmra.mrb[0].mxu1 %vm68_vm1, %v216_v14 }
 0x18f   :  { %1035 = vmatpush3.bf16.xpose.msra.mxu0 %v173_v15  ;;  %1036 = vmatprep.mubr.msk.bf16.mxu0 %vm1262_vm0, %v1261_v0 }
 0x190   :  { %1046 = vmatprep.subr.bf16.mxu0 %v1261_v0  ;;  %1054 = vmatprep.mubr.msk.bf16.mxu1 %vm1262_vm0, %v1261_v0 }
 0x196   :  { %1037 = vmatmul.mubr.msk.bf16.vlgmr.msra.gmra.mrb[8].mxu0 %vm68_vm1, %v1349_v10 }
 0x197   :  { %1047 = vmatpush3.bf16.xpose.msra.mxu0 %v173_v15  ;;  %1048 = vmatprep.mubr.msk.bf16.mxu0 %vm1262_vm0, %v1261_v0 }
 0x198   :  { %1058 = vmatprep.subr.bf16.mxu0 %v1261_v0 }
 0x19e   :  { %1049 = vmatmul.mubr.msk.bf16.vlgmr.msra.gmra.mrb[12].mxu0 %vm68_vm1, %v261_v16 }
 0x19f   :  { %1060 = vmatprep.mubr.msk.bf16.mxu0 %vm1262_vm0, %v1261_v0 }
 0x261   :  { %v161_v17 = vpop.f32.mrb[4].mxu0  ;;  %v254_v18 = vpop.f32.mrb[0].mxu1 }
 0x262   :  { %v305_v19 = vmul.f32 %v161_v17, %v161_v17  ;;  %v307_v20 = vmul.f32 %v254_v18, %v254_v18  ;;  %v1032_v21 = vpop.f32.mrb[5].mxu0  ;;  %v1044_v22 = vpop.f32.mrb[1].mxu1 }
 0x263   :  { %v164_v23 = vpop.f32.mrb[6].mxu0  ;;  %v257_v24 = vpop.f32.mrb[2].mxu1 }
 0x264   :  { %v309_v25 = vadd.f32 %v307_v20, %v305_v19  ;;  %v1033_v26 = vpop.f32.mrb[7].mxu0  ;;  %v1045_v27 = vpop.f32.mrb[3].mxu1 }
 0x266   :  { %1136 = vrsqrt.f32 %v309_v25  ;;  %vm313_vm3 = vcmp.eq.f32.partialorder %v309_v25, inf  ;;  %v316_v38 = vand.u32 2147483648, %v309_v25  ;;  %vm315_vm4 = vcmp.eq.f32.partialorder %v309_v25, 0.0 }
 0x269   :  { %v209_v28 = vpop.f32.mrb[8].mxu0 }
 0x26a   :  { %v1038_v29 = vpop.f32.mrb[9].mxu0  ;;  %v306_v35 = vmul.f32 %v209_v28, %v209_v28 }
 0x26b   :  { %v212_v30 = vpop.f32.mrb[10].mxu0 }
 0x26c   :  { %v1039_v31 = vpop.f32.mrb[11].mxu0 }
 0x270   :  { %v1137_v32 = vpop.eup %1136 }
 0x271   :  { %v299_v33 = vpop.f32.mrb[12].mxu0  ;;  %v312_v34 = vmul.f32 %v1137_v32, %v309_v25 }
 0x272   :  { %v308_v36 = vmul.f32 %v299_v33, %v299_v33  ;;  %v1050_v37 = vpop.f32.mrb[13].mxu0 }
 0x273   :  { %v302_v39 = vpop.f32.mrb[14].mxu0  ;;  %v314_v40 = vsel %vm313_vm3, %v309_v25, %v312_v34  ;;  %vm949_vm3 = vcmask 1048455  }
 0x274   :  { %v310_v41 = vadd.f32 %v308_v36, %v306_v35  ;;  %v1051_v42 = vpop.f32.mrb[15].mxu0  ;;  %v317_v43 = vsel %vm315_vm4, %v316_v38, %v314_v40 }
 0x275   :  { %v326_v44 = vsel %vm325_vm2, %v317_v43, -inf }
 0x276   :  { %327 = vmax.xlane.f32.xlu0 %v326_v44  ;;  %1138 = vrsqrt.f32 %v310_v41  ;;  %vm320_vm5 = vcmp.eq.f32.partialorder %v310_v41, inf  ;;  %v323_v47 = vand.u32 2147483648, %v310_v41  ;;  %vm322_vm6 = vcmp.eq.f32.partialorder %v310_v41, 0.0 }
 0x280   :  { %v1139_v45 = vpop.eup %1138 }
 0x281   :  { %v319_v46 = vmul.f32 %v1139_v45, %v310_v41 }
 0x283   :  { %v321_v48 = vsel %vm320_vm5, %v310_v41, %v319_v46 }
 0x284   :  { %v324_v49 = vsel %vm322_vm6, %v323_v47, %v321_v48 }
 0x285   :  { %v329_v50 = vsel %vm325_vm2, %v324_v49, -inf }
 0x286   :  { %330 = vmax.xlane.f32.xlu1 %v329_v50 }
 0x297   :  { %350 = vrot.lane.b32.xlu1 %v1343_v6, %s1265_s25 }
 0x29b   :  { %452 = vrot.lane.b32.xlu1 %v1343_v6, %s1266_s26 }
 0x29f   :  { %502 = vrot.lane.b32.xlu1 %v1349_v10, %s1266_s26 }
 0x2a3   :  { %500 = vrot.lane.b32.xlu1 %v1349_v10, %s1255_s22 }
 0x2a7   :  { %595 = vrot.lane.b32.xlu1 %v1349_v10, %s1267_s27 }
 0x303   :  { %v328_v51 = vpop.xlane.xlu0 %327 }
 0x304   :  { %v332_v52 = vsub.f32 %v317_v43, %v328_v51 }
 0x306   :  { %v334_v53 = vmul.f32 1.442695, %v332_v52 }
 0x308   :  { %1140 = vpow2.f32 %v334_v53 }
 0x312   :  { %v1141_v54 = vpop.eup %1140 }
 0x313   :  { %v331_v55 = vpop.xlane.xlu1 %330  ;;  %v338_v56 = vsel %vm325_vm2, %v1141_v54, 0.0 }
 0x314   :  { %v333_v57 = vsub.f32 %v324_v49, %v331_v55  ;;  %339 = vadd.xlane.f32.xlu0 %v338_v56 }
 0x316   :  { %v336_v58 = vmul.f32 1.442695, %v333_v57 }
 0x317   :  { %v351_v59 = vpop.permute.xlu1 %350 }
 0x318   :  { %1142 = vpow2.f32 %v336_v58  ;;  %v357_v60 = vsel %vm355_vm7, %v351_v59, 0 }
 0x319   :  { %1053 = vmatpush3.bf16.msra.mxu1 %v357_v60 }
 0x31a   :  { %1064 = vmatprep.subr.bf16.mxu1 %v1261_v0 }
 0x31b   :  { %v453_v3 = vpop.permute.xlu1 %452 }
 0x31c   :  { %v458_v5 = vsel %vm68_vm1, %v453_v3, 0 }
 0x31f   :  { %v503_v14 = vpop.permute.xlu1 %502 }
 0x320   :  { %v508_v16 = vsel %vm68_vm1, %v503_v14, 0 }
 0x322   :  { %v1143_v61 = vpop.eup %1142 }
 0x323   :  { %v341_v62 = vsel %vm325_vm2, %v1143_v61, 0.0  ;;  %v501_v18 = vpop.permute.xlu1 %500 }
 0x324   :  { %342 = vadd.xlane.f32.xlu0 %v341_v62 }
 0x327   :  { %v596_v19 = vpop.permute.xlu1 %595 }
 0x33a   :  { %399 = vrot.lane.b32.xlu0 %v1349_v10, %s1265_s25 }
 0x33e   :  { %450 = vrot.lane.b32.xlu0 %v1343_v6, %s1255_s22 }
 0x342   :  { %550 = vrot.lane.b32.xlu0 %v1343_v6, %s1267_s27 }
 0x3a1   :  { %v340_v63 = vpop.xlane.xlu0 %339 }
 0x3a2   :  { %1144 = vrcp.f32 %v340_v63 }
 0x3ac   :  { %v1145_v1 = vpop.eup %1144 }
 0x3ad   :  { %v346_v2 = vmul.f32 %v1145_v1, %v1141_v54 }
 0x3af   :  { %v348_v4 = vpack.c.bf16 %v346_v2, %v346_v2 }
 0x3b1   :  { %v343_v7 = vpop.xlane.xlu0 %342  ;;  %1055 = vmatmul.mubr.msk.bf16.vlgmr.msra.gmra.mrb[4].mxu1 %vm325_vm2, %v348_v4 }
 0x3b2   :  { %1146 = vrcp.f32 %v343_v7  ;;  %1065 = vmatpush3.bf16.xpose.msra.mxu1 %v458_v5  ;;  %1066 = vmatprep.mubr.msk.bf16.mxu1 %vm1262_vm0, %v1261_v0 }
 0x3b3   :  { %1076 = vmatprep.subr.bf16.mxu1 %v1261_v0 }
 0x3b5   :  { %v400_v8 = vpop.permute.xlu0 %399 }
 0x3b6   :  { %v405_v9 = vsel %vm355_vm7, %v400_v8, 0 }
 0x3b7   :  { %1059 = vmatpush3.bf16.msra.mxu0 %v405_v9 }
 0x3b8   :  { %1070 = vmatprep.subr.bf16.mxu0 %v1261_v0 }
 0x3b9   :  { %v451_v11 = vpop.permute.xlu0 %450 }
 0x3ba   :  { %1067 = vmatmul.mubr.msk.bf16.vlgmr.msra.gmra.mrb[8].mxu1 %vm68_vm1, %v451_v11 }
 0x3bb   :  { %1077 = vmatpush3.bf16.xpose.msra.mxu1 %v458_v5  ;;  %1078 = vmatprep.mubr.msk.bf16.mxu1 %vm1262_vm0, %v1261_v0 }
 0x3bc   :  { %v1147_v12 = vpop.eup %1146  ;;  %1088 = vmatprep.subr.bf16.mxu1 %v1261_v0 }
 0x3bd   :  { %v347_v13 = vmul.f32 %v1147_v12, %v1143_v61  ;;  %v551_v17 = vpop.permute.xlu0 %550 }
 0x3bf   :  { %v349_v15 = vpack.c.bf16 %v347_v13, %v347_v13 }
 0x3c1   :  { %1061 = vmatmul.mubr.msk.bf16.vlgmr.msra.gmra.mrb[16].mxu0 %vm325_vm2, %v349_v15 }
 0x3c2   :  { %1071 = vmatpush3.bf16.xpose.msra.mxu0 %v508_v16  ;;  %1079 = vmatmul.mubr.msk.bf16.vlgmr.msra.gmra.mrb[12].mxu1 %vm68_vm1, %v551_v17 }
 0x3c3   :  { %1072 = vmatprep.mubr.msk.bf16.mxu0 %vm1262_vm0, %v1261_v0  ;;  %1082 = vmatprep.subr.bf16.mxu0 %v1261_v0 }
 0x3c4   :  { %1090 = vmatprep.mubr.msk.bf16.mxu1 %vm1262_vm0, %v1261_v0 }
 0x3c9   :  { %1073 = vmatmul.mubr.msk.bf16.vlgmr.msra.gmra.mrb[20].mxu0 %vm68_vm1, %v501_v18 }
 0x3ca   :  { %1083 = vmatpush3.bf16.xpose.msra.mxu0 %v508_v16  ;;  %1084 = vmatprep.mubr.msk.bf16.mxu0 %vm1262_vm0, %v1261_v0 }
 0x3cb   :  { %1094 = vmatprep.subr.bf16.mxu0 %v1261_v0 }
 0x3d1   :  { %1085 = vmatmul.mubr.msk.bf16.vlgmr.msra.gmra.mrb[24].mxu0 %vm68_vm1, %v596_v19 }
 0x3d2   :  { %1096 = vmatprep.mubr.msk.bf16.mxu0 %vm1262_vm0, %v1261_v0 }
 0x484   :  { %v1423_v20 = vpop.f32.mrb[4].mxu1 }
 0x485   :  { %v1056_v21 = vpop.f32.mrb[5].mxu1 }
 0x486   :  { %v396_v22 = vpop.f32.mrb[6].mxu1 }
 0x487   :  { %v1057_v23 = vpop.f32.mrb[7].mxu1 }
 0x48d   :  { %v494_v24 = vpop.f32.mrb[8].mxu1 }
 0x48e   :  { %v1068_v25 = vpop.f32.mrb[9].mxu1  ;;  %v640_v32 = vmul.f32 %v494_v24, %v494_v24 }
 0x48f   :  { %v497_v26 = vpop.f32.mrb[10].mxu1 }
 0x490   :  { %v1069_v27 = vpop.f32.mrb[11].mxu1 }
 0x494   :  { %v1425_v28 = vpop.f32.mrb[16].mxu0 }
 0x495   :  { %v447_v29 = vpack.c.bf16 %v1425_v28, %v1423_v20  ;;  %v1062_v30 = vpop.f32.mrb[17].mxu0  ;;  %v589_v31 = vpop.f32.mrb[12].mxu1 }
 0x496   :  { %v642_v33 = vmul.f32 %v589_v31, %v589_v31  ;;  %v444_v34 = vpop.f32.mrb[18].mxu0  ;;  %v1080_v35 = vpop.f32.mrb[13].mxu1  ;;  %v1135_v31 = vld [vmem:[#allocation7] sm:$0xff]  }
 0x497   :  { %v1063_v36 = vpop.f32.mrb[19].mxu0  ;;  %v592_v37 = vpop.f32.mrb[14].mxu1 }
 0x498   :  { %v644_v38 = vadd.f32 %v642_v33, %v640_v32  ;;  %v1081_v39 = vpop.f32.mrb[15].mxu1 }
 0x49a   :  { %1148 = vrsqrt.f32 %v644_v38  ;;  %vm648_vm8 = vcmp.eq.f32.partialorder %v644_v38, inf  ;;  %v651_v51 = vand.u32 2147483648, %v644_v38  ;;  %vm650_vm9 = vcmp.eq.f32.partialorder %v644_v38, 0.0 }
 0x49c   :  { %v544_v40 = vpop.f32.mrb[20].mxu0 }
 0x49d   :  { %v1074_v41 = vpop.f32.mrb[21].mxu0  ;;  %v641_v46 = vmul.f32 %v544_v40, %v544_v40 }
 0x49e   :  { %v547_v42 = vpop.f32.mrb[22].mxu0 }
 0x49f   :  { %v1075_v43 = vpop.f32.mrb[23].mxu0 }
 0x4a4   :  { %v1149_v44 = vpop.eup %1148  ;;  %v634_v45 = vpop.f32.mrb[24].mxu0 }
 0x4a5   :  { %v643_v47 = vmul.f32 %v634_v45, %v634_v45  ;;  %v1086_v48 = vpop.f32.mrb[25].mxu0  ;;  %v647_v49 = vmul.f32 %v1149_v44, %v644_v38 }
 0x4a6   :  { %v637_v50 = vpop.f32.mrb[26].mxu0 }
 0x4a7   :  { %v645_v52 = vadd.f32 %v643_v47, %v641_v46  ;;  %v1087_v53 = vpop.f32.mrb[27].mxu0  ;;  %v649_v54 = vsel %vm648_vm8, %v644_v38, %v647_v49 }
 0x4a8   :  { %v652_v55 = vsel %vm650_vm9, %v651_v51, %v649_v54 }
 0x4a9   :  { %v660_v56 = vsel %vm325_vm2, %v652_v55, -inf  ;;  %1150 = vrsqrt.f32 %v645_v52  ;;  %vm655_vm10 = vcmp.eq.f32.partialorder %v645_v52, inf  ;;  %v658_v59 = vand.u32 2147483648, %v645_v52 }
 0x4aa   :  { %661 = vmax.xlane.f32.xlu0 %v660_v56  ;;  %vm657_vm11 = vcmp.eq.f32.partialorder %v645_v52, 0.0 }
 0x4b3   :  { %v1151_v57 = vpop.eup %1150 }
 0x4b4   :  { %v654_v58 = vmul.f32 %v1151_v57, %v645_v52 }
 0x4b6   :  { %v656_v60 = vsel %vm655_vm10, %v645_v52, %v654_v58 }
 0x4b7   :  { %v659_v61 = vsel %vm657_vm11, %v658_v59, %v656_v60 }
 0x4b8   :  { %v663_v62 = vsel %vm325_vm2, %v659_v61, -inf }
 0x4b9   :  { %664 = vmax.xlane.f32.xlu1 %v663_v62 }
 0x4ca   :  { %684 = vrot.lane.b32.xlu1 %v1343_v6, %s1268_s28 }
 0x537   :  { %v662_v63 = vpop.xlane.xlu0 %661 }
 0x538   :  { %v666_v1 = vsub.f32 %v652_v55, %v662_v63 }
 0x53a   :  { %v668_v2 = vmul.f32 1.442695, %v666_v1 }
 0x53c   :  { %1152 = vpow2.f32 %v668_v2 }
 0x546   :  { %v1153_v3 = vpop.eup %1152  ;;  %v665_v4 = vpop.xlane.xlu1 %664 }
 0x547   :  { %v667_v5 = vsub.f32 %v659_v61, %v665_v4  ;;  %v672_v7 = vsel %vm325_vm2, %v1153_v3, 0.0 }
 0x548   :  { %673 = vadd.xlane.f32.xlu0 %v672_v7 }
 0x549   :  { %v670_v8 = vmul.f32 1.442695, %v667_v5 }
 0x54a   :  { %v685_v9 = vpop.permute.xlu1 %684 }
 0x54b   :  { %1154 = vpow2.f32 %v670_v8  ;;  %v690_v11 = vsel %vm355_vm7, %v685_v9, 0 }
 0x54c   :  { %1089 = vmatpush3.bf16.msra.mxu1 %v690_v11 }
 0x54d   :  { %1100 = vmatprep.subr.bf16.mxu1 %v1261_v0 }
 0x555   :  { %v1155_v12 = vpop.eup %1154 }
 0x556   :  { %v675_v6 = vsel %vm325_vm2, %v1155_v12, 0.0 }
 0x557   :  { %676 = vadd.xlane.f32.xlu0 %v675_v6 }
 0x56d   :  { %732 = vrot.lane.b32.xlu0 %v1349_v10, %s1268_s28  ;;  %v1134_v10 = vld [vmem:[#allocation7 + $0x8] sm:$0xff]  }
 0x5d5   :  { %v674_v13 = vpop.xlane.xlu0 %673 }
 0x5d6   :  { %1156 = vrcp.f32 %v674_v13 }
 0x5e0   :  { %v1157_v14 = vpop.eup %1156 }
 0x5e1   :  { %v680_v15 = vmul.f32 %v1157_v14, %v1153_v3 }
 0x5e3   :  { %v682_v16 = vpack.c.bf16 %v680_v15, %v680_v15 }
 0x5e4   :  { %v677_v17 = vpop.xlane.xlu0 %676 }
 0x5e5   :  { %1158 = vrcp.f32 %v677_v17  ;;  %1091 = vmatmul.mubr.msk.bf16.vlgmr.msra.gmra.mrb[16].mxu1 %vm325_vm2, %v682_v16 }
 0x5e6   :  { %1102 = vmatprep.mubr.msk.bf16.mxu1 %vm1262_vm0, %v1261_v0  ;;  %1101 = vmatpush3.bf16.msra.mxu1 %v1134_v10 }
 0x5e7   :  { %1106 = vmatprep.subr.bf16.mxu1 %v1261_v0 }
 0x5e8   :  { %v733_v18 = vpop.permute.xlu0 %732 }
 0x5e9   :  { %v738_v19 = vsel %vm355_vm7, %v733_v18, 0 }
 0x5ea   :  { %1095 = vmatpush3.bf16.msra.mxu0 %v738_v19 }
 0x5ef   :  { %v1159_v21 = vpop.eup %1158 }
 0x5f0   :  { %v681_v22 = vmul.f32 %v1159_v21, %v1155_v12 }
 0x5f2   :  { %v683_v23 = vpack.c.bf16 %v681_v22, %v681_v22 }
 0x5f4   :  { %1097 = vmatmul.mubr.msk.bf16.vlgmr.msra.gmra.mrb[28].mxu0 %vm325_vm2, %v683_v23  ;;  %vm940_vm2 = vcmask 916230  }
 0x6b8   :  { %v726_v24 = vpop.f32.mrb[16].mxu1 }
 0x6b9   :  { %v1092_v25 = vpop.f32.mrb[17].mxu1 }
 0x6ba   :  { %v729_v26 = vpop.f32.mrb[18].mxu1 }
 0x6bb   :  { %v1093_v27 = vpop.f32.mrb[19].mxu1 }
 0x6c7   :  { %v774_v30 = vpop.f32.mrb[28].mxu0 }
 0x6c8   :  { %v780_v32 = vpack.c.bf16 %v774_v30, %v726_v24  ;;  %v1098_v33 = vpop.f32.mrb[29].mxu0 }
 0x6c9   :  { %v777_v34 = vpop.f32.mrb[30].mxu0 }
 0x6ca   :  { %v1099_v35 = vpop.f32.mrb[31].mxu0  ;;  %1103 = vmatmul.mubr.msk.bf16.vlgmr.msra.gmra.mrb[20].mxu1 %vm68_vm1, %v780_v32 }
 0x6cb   :  { %1107 = vmatpush3.bf16.msra.mxu1 %v1135_v31  ;;  %1108 = vmatprep.mubr.msk.bf16.mxu1 %vm1262_vm0, %v1261_v0  ;;  %vm922_vm0 = vcmask 651780  }
 0x6d6   :  { %1109 = vmatmul.mubr.msk.bf16.vlgmr.msra.gmra.mrb[20].mxu1 %vm68_vm1, %v447_v29  ;;  %vm931_vm1 = vcmask 784005  }
 0x7a9   :  { %v877_v36 = vpop.f32.mrb[20].mxu1 }
 0x7aa   :  { %898 = vrot.lane.b32.xlu0 %v877_v36, %s1266_s26  ;;  %889 = vrot.lane.b32.xlu1 %v877_v36, %s1268_s28  ;;  %v1110_v37 = vpop.f32.mrb[21].mxu1  ;;  %885 = vst.msk [vmem:[#allocation8] sm:$0x1] %vm884_vm12, %v877_v36 }
 0x7ab   :  { %v880_v38 = vpop.f32.mrb[22].mxu1 }
 0x7ac   :  { %v1111_v39 = vpop.f32.mrb[23].mxu1  ;;  %886 = vst.msk [vmem:[#allocation8 + $0x1] sm:$0x1] %vm884_vm12, %v880_v38 }
 0x7ae   :  { %907 = vrot.lane.b32.xlu0 %v877_v36, %s1267_s27  ;;  %891 = vrot.lane.b32.xlu1 %v880_v38, %s1268_s28 }
 0x7b2   :  { %916 = vrot.lane.b32.xlu0 %v877_v36, %s1255_s22  ;;  %900 = vrot.lane.b32.xlu1 %v880_v38, %s1266_s26 }
 0x7b6   :  { %925 = vrot.lane.b32.xlu0 %v877_v36, %s1265_s25  ;;  %909 = vrot.lane.b32.xlu1 %v880_v38, %s1267_s27 }
 0x7ba   :  { %934 = vrot.lane.b32.xlu0 %v877_v36, %s1264_s23  ;;  %918 = vrot.lane.b32.xlu1 %v880_v38, %s1255_s22  ;;  %s1269_s22 = smov [#allocation8]  }
 0x7bb   :  { %s957_s29 = sshll.u32 %s1269_s22, 4  ;;  %s958_s29 = int_to_ptr.vmem [resolvable:$true] %s957_s29 }
 0x7bc   :  { %s1226_s30 = scalar_lea.vmem %s958_s29, 32  ;;  %p1231_p11 = scmp.lt.s32.totalorder %s958_s29, %s958_s29 }
 0x7bd   :  { %p1227_p10 = scmp.ne.s32.totalorder %s958_s29, %s1226_s30  ;;  %p1232_p12 = scmp.lt.s32.totalorder %s1226_s30, %s1226_s30 }
 0x7be   :  { %943 = vrot.lane.b32.xlu0 %v877_v36, %s1263_s2  ;;  %927 = vrot.lane.b32.xlu1 %v880_v38, %s1265_s25 }
 0x7bf   :  { %p1233_p13 = por %p1232_p12, %p1231_p11 }
 0x7c1   :  { %p1234_p0 = pnand %p1233_p13, %p1227_p10 }
 0x7c2   :  { %936 = vrot.lane.b32.xlu1 %v880_v38, %s1264_s23 }
 0x7c6   :  { %945 = vrot.lane.b32.xlu1 %v880_v38, %s1263_s2 }
 0x81c   :  { %v899_v0 = vpop.permute.xlu0 %898  ;;  %v890_v20 = vpop.permute.xlu1 %889 }
 0x81d   :  { %896 = vst.msk [vmem:[#allocation8 - $0x1] sm:$0x2] %vm895_vm13, %v890_v20 }
 0x81e   :  { %905 = vst.msk [vmem:[#allocation8 - $0x2] sm:$0x4] %vm904_vm14, %v899_v0 }
 0x820   :  { %v908_v28 = vpop.permute.xlu0 %907  ;;  %v892_v29 = vpop.permute.xlu1 %891 }
 0x821   :  { %914 = vst.msk [vmem:[#allocation8 - $0x3] sm:$0x8] %vm913_vm15, %v908_v28 }
 0x822   :  { %897 = vst.msk [vmem:[#allocation8] sm:$0x2] %vm895_vm13, %v892_v29 }
 0x824   :  { %v917_v40 = vpop.permute.xlu0 %916  ;;  %v901_v41 = vpop.permute.xlu1 %900 }
 0x825   :  { %923 = vst.msk [vmem:[#allocation8 - $0x4] sm:$0x10] %vm922_vm0, %v917_v40 }
 0x826   :  { %906 = vst.msk [vmem:[#allocation8 - $0x1] sm:$0x4] %vm904_vm14, %v901_v41 }
 0x828   :  { %v926_v42 = vpop.permute.xlu0 %925  ;;  %v910_v43 = vpop.permute.xlu1 %909 }
 0x829   :  { %932 = vst.msk [vmem:[#allocation8 - $0x5] sm:$0x20] %vm931_vm1, %v926_v42 }
 0x82a   :  { %915 = vst.msk [vmem:[#allocation8 - $0x2] sm:$0x8] %vm913_vm15, %v910_v43 }
 0x82c   :  { %v935_v44 = vpop.permute.xlu0 %934  ;;  %v919_v45 = vpop.permute.xlu1 %918 }
 0x82d   :  { %941 = vst.msk [vmem:[#allocation8 - $0x6] sm:$0x40] %vm940_vm2, %v935_v44 }
 0x82e   :  { %924 = vst.msk [vmem:[#allocation8 - $0x3] sm:$0x10] %vm922_vm0, %v919_v45 }
 0x830   :  { %v944_v46 = vpop.permute.xlu0 %943  ;;  %v928_v47 = vpop.permute.xlu1 %927 }
 0x831   :  { %950 = vst.msk [vmem:[#allocation8 - $0x7] sm:$0x80] %vm949_vm3, %v944_v46 }
 0x832   :  { %933 = vst.msk [vmem:[#allocation8 - $0x4] sm:$0x20] %vm931_vm1, %v928_v47 }
 0x834   :  { %v937_v48 = vpop.permute.xlu1 %936 }
 0x835   :  { %942 = vst.msk [vmem:[#allocation8 - $0x5] sm:$0x40] %vm940_vm2, %v937_v48 }
 0x838   :  { %v946_v49 = vpop.permute.xlu1 %945 }
 0x839   :  { %951 = vst.msk [vmem:[#allocation8 - $0x6] sm:$0x80] %vm949_vm3, %v946_v49 }
 0x83a   :  { %1237 = shalt.err (!%p1234_p0)
}
 0x83b   :  { %s1238_s6 = scalar_lea.hbm %s1483_s3, 32 }
 0x83c   :  { %p1239_p1 = scmp.ne.s32.totalorder %s1483_s3, %s1238_s6  ;;  %p1242_p2 = scmp.lt.u32.totalorder %s1238_s6, %s1483_s3 }
 0x83e   :  { %p1244_p3 = pnand %p1242_p2, %p1239_p1 }
 0x840   :  { %1247 = shalt.err (!%p1244_p3)
}
 0x841   :  { %s1270_s10 = smov 1  }
 0x842   :  { %963 = dma.vmem_to_hbm [thread:$0]  %s958_s29, 32, %s1483_s3, [#allocation4], %s1268_s28, %s1268_s28, %s1270_s10  }
 0x843   :  { %1252 = dma.done.wait [#allocation4], 32  }
 0x844   :  { %1253 = vsyncadd [#allocation4], 4294967264 }
 0x845   :  { %967 = vsyncpa [#allocation3], 1 }
 0x846   :  { %968 = vsyncpa [#allocation6], 1 }
 0x847   :  { %969 = vsyncpa [#allocation4], 1 }

</bundles_post_ra>
